<compile_context>
chip_gen: v7x
topology: tpu7x:2x2x1
jax: 0.10.0
libtpu: 0.0.40
codegen_flags: <defaults>
</compile_context>

<pallas_src>
import functools
import math

import jax
import jax.numpy as jnp
from jax.experimental import pallas as pl
from jax.experimental.pallas import tpu as pltpu


# Total double-buffered (in + out) per-step footprint we aim for, and the
# explicit scoped-VMEM limit we request.  32 MiB is safe on v5e/v6e (128 MiB
# physical) and on v7x (64 MiB physical).
_PIPELINE_BUDGET_BYTES = 16 * 1024 * 1024
_VMEM_LIMIT_BYTES = 32 * 1024 * 1024


def _sublane_multiple(dtype):
    itemsize = jnp.dtype(dtype).itemsize
    return {4: 8, 2: 16, 1: 32}.get(itemsize, 8)


def _divisors(n):
    ds = set()
    i = 1
    while i * i <= n:
        if n % i == 0:
            ds.add(i)
            ds.add(n // i)
        i += 1
    return sorted(ds)


def _choose_flat_block(z_elems, in_elems, dtype, block_budget_bytes):
    """Pick (lane_width WL, rows tr) for the flat lane-dense path.

    Requirements: WL % 128 == 0, tr % sublane_multiple == 0, and the block
    size tr*WL divides gcd(z_elems, in_elems) so every block is purely zeros
    or purely copied data.  Maximizes the block size under the VMEM budget.
    Returns None if no legal factorization exists.
    """
    g = math.gcd(z_elems, in_elems)
    if g % 128 != 0:
        return None
    sub = _sublane_multiple(dtype)
    item = jnp.dtype(dtype).itemsize
    best = None  # (block_elems, WL, tr)
    for wl in _divisors(g):
        if wl % 128 != 0:
            continue
        q = g // wl
        for tr in _divisors(q):
            if tr % sub != 0:
                continue
            blk = tr * wl
            if blk * item > block_budget_bytes:
                continue
            cand = (blk, wl, tr)
            if best is None or cand > best:
                best = cand
    if best is None:
        return None
    return best[1], best[2]


def _pick_lane_tile(hw, resident_rows, itemsize, budget_bytes):
    """Fallback path lane tile: multiple-of-128 divisor of H*W within budget."""
    if hw % 128 != 0:
        return hw  # full lane dim (equals the array dim -> allowed)
    best = 128
    for d in _divisors(hw // 128):
        ts = 128 * d
        if 2 * resident_rows * ts * itemsize <= budget_bytes and ts > best:
            best = ts
    return best


def _flat_pad_kernel(x_ref, o_ref, *, n_zero_blocks):
    # Grid = (batch, output_block); output blocks are either all-zero or a
    # straight contiguous copy of one input block.
    j = pl.program_id(1)

    @pl.when(j < n_zero_blocks)
    def _zero():
        o_ref[...] = jnp.zeros(o_ref.shape, o_ref.dtype)

    @pl.when(j >= n_zero_blocks)
    def _copy():
        o_ref[...] = x_ref[...]


def _pad_full_kernel(x_ref, o_ref, *, n_pad):
    # Fallback: whole channel slab per step (sublane-misaligned stores; only
    # used when no lane-dense factorization exists).
    o_ref[:, :n_pad, :] = jnp.zeros((1, n_pad, o_ref.shape[2]), dtype=o_ref.dtype)
    o_ref[:, n_pad:, :] = x_ref[...]


def _channel_pad(x, n_pad):
    """x (B,C,H,W) zero-padded with n_pad leading channels -> (B, C+n_pad, H, W)."""
    B, C, H, W = x.shape
    if n_pad == 0:
        return x
    C_out = C + n_pad
    HW = H * W
    f_in = C * HW          # copied elements per batch
    z = n_pad * HW         # zero elements per batch
    f_out = f_in + z
    dtype = x.dtype
    item = jnp.dtype(dtype).itemsize

    flat = _choose_flat_block(z, f_in, dtype, _PIPELINE_BUDGET_BYTES // 4)
    if flat is not None:
        wl, tr = flat
        blk = wl * tr
        z_blocks = z // blk
        out_blocks = f_out // blk
        in_rows = f_in // wl
        out_rows = f_out // wl
        x3 = x.reshape(B, in_rows, wl)   # lane-dense flat per-batch view

        padded = pl.pallas_call(
            functools.partial(_flat_pad_kernel, n_zero_blocks=z_blocks),
            out_shape=jax.ShapeDtypeStruct((B, out_rows, wl), dtype),
            grid_spec=pltpu.PrefetchScalarGridSpec(
                num_scalar_prefetch=0,
                grid=(B, out_blocks),
                in_specs=[
                    pl.BlockSpec(
                        (1, tr, wl),
                        # Zero blocks pin to input block 0, which the first
                        # copy block reuses -> no extra input DMA (requires
                        # sequential iteration over this axis -> "arbitrary").
                        lambda b, j, zb=z_blocks: (b, jnp.maximum(j - zb, 0), 0),
                    )
                ],
                out_specs=pl.BlockSpec((1, tr, wl), lambda b, j: (b, j, 0)),
            ),
            compiler_params=pltpu.CompilerParams(
                dimension_semantics=("parallel", "arbitrary"),
                vmem_limit_bytes=_VMEM_LIMIT_BYTES,
            ),
        )(x3)
        return padded.reshape(B, C_out, H, W)

    # Fallback: full channel slab per step, spatially tiled.
    x2 = x.reshape(B, C, HW)
    ts = _pick_lane_tile(HW, C + C_out, item, _PIPELINE_BUDGET_BYTES)
    n_sblk = HW // ts

    padded = pl.pallas_call(
        functools.partial(_pad_full_kernel, n_pad=n_pad),
        out_shape=jax.ShapeDtypeStruct((B, C_out, HW), dtype),
        grid_spec=pltpu.PrefetchScalarGridSpec(
            num_scalar_prefetch=0,
            grid=(B, n_sblk),
            in_specs=[pl.BlockSpec((1, C, ts), lambda b, s: (b, 0, s))],
            out_specs=pl.BlockSpec((1, C_out, ts), lambda b, s: (b, 0, s)),
        ),
        compiler_params=pltpu.CompilerParams(
            dimension_semantics=("parallel", "parallel"),
            vmem_limit_bytes=_VMEM_LIMIT_BYTES,
        ),
    )(x2)
    return padded.reshape(B, C_out, H, W)


def zero_pad_shortcut(x, n_channels, stride=1):
    """Equivalent of ZeroPadShortcut(n_channels, stride).forward(x) on NCHW x."""
    B, C, H, W = x.shape
    C_out = C + n_channels

    if stride == 1:
        return _channel_pad(x, n_channels)

    # torch resize_ keeps the first k contiguous elements of the padded tensor.
    Ho, Wo = H // stride, W // stride
    new_shape = (B, C_out, Ho, Wo)
    k = B * C_out * Ho * Wo
    if k == 0:
        return jnp.zeros(new_shape, x.dtype)

    per_batch = C_out * H * W
    z = n_channels * H * W
    b_full = k // per_batch          # batches that survive completely
    rem = k - b_full * per_batch     # surviving prefix of the next batch

    pieces = []
    if b_full > 0:
        # Only the fully-surviving batches go through the pad kernel.
        pieces.append(_channel_pad(x[:b_full], n_channels).reshape(-1))
    if rem > 0:
        rem_zero = min(rem, z)
        rem_copy = rem - rem_zero
        if rem_zero > 0:
            pieces.append(jnp.zeros((rem_zero,), dtype=x.dtype))
        if rem_copy > 0:
            pieces.append(x[b_full].reshape(-1)[:rem_copy])

    flat = pieces[0] if len(pieces) == 1 else jnp.concatenate(pieces)
    return flat.reshape(new_shape)


if __name__ == "__main__":
    key = jax.random.PRNGKey(0)

    # 1) Primary config (matches module usage): flat lane-dense path.
    B, C, H, W = 2, 4, 16, 16
    n_channels = 4
    x = jax.random.normal(key, (B, C, H, W), dtype=jnp.float32)
    out = jax.block_until_ready(zero_pad_shortcut(x, n_channels, stride=1))
    ref = jnp.pad(x, ((0, 0), (n_channels, 0), (0, 0), (0, 0)))
    assert out.shape == (B, C + n_channels, H, W), out.shape
    assert jnp.array_equal(out, ref), "mismatch vs reference (stride=1)"

    # 2) Flat path with H*W NOT a multiple of 128 (12*12 = 144): lane-dense
    #    tiling still applies because gcd(n_pad, C) * H * W factors cleanly.
    x2 = jax.random.normal(jax.random.PRNGKey(1), (2, 64, 12, 12), jnp.float32)
    out2 = jax.block_until_ready(zero_pad_shortcut(x2, 64, stride=1))
    ref2 = jnp.pad(x2, ((0, 0), (64, 0), (0, 0), (0, 0)))
    assert jnp.array_equal(out2, ref2), "mismatch vs reference (flat, HW%128!=0)"

    # 3) Fallback slab path (no aligned flat factorization: C=3, n_pad=5).
    x3 = jax.random.normal(jax.random.PRNGKey(2), (2, 3, 16, 16), jnp.float32)
    out3 = jax.block_until_ready(zero_pad_shortcut(x3, 5, stride=1))
    ref3 = jnp.pad(x3, ((0, 0), (5, 0), (0, 0), (0, 0)))
    assert jnp.array_equal(out3, ref3), "mismatch vs reference (fallback path)"

    # 4) stride=2 (torch resize_ keeps the first k contiguous elements).
    out4 = jax.block_until_ready(zero_pad_shortcut(x, n_channels, stride=2))
    k4 = B * (C + n_channels) * (H // 2) * (W // 2)
    ref4 = ref.reshape(-1)[:k4].reshape(B, C + n_channels, H // 2, W // 2)
    assert jnp.array_equal(out4, ref4), "mismatch vs reference (stride=2)"

    # 5) stride=2 with one fully-surviving batch plus a partial remainder that
    #    contains copied data (exercises the mixed truncation path).
    x5 = jax.random.normal(jax.random.PRNGKey(3), (6, 12, 16, 16), jnp.float32)
    out5 = jax.block_until_ready(zero_pad_shortcut(x5, 4, stride=2))
    k5 = 6 * 16 * 8 * 8
    ref5 = jnp.pad(x5, ((0, 0), (4, 0), (0, 0), (0, 0)))
    ref5 = ref5.reshape(-1)[:k5].reshape(6, 16, 8, 8)
    assert jnp.array_equal(out5, ref5), "mismatch vs reference (stride=2 mixed)"

    print("KERNEL_OK")
</pallas_src>

<mosaic_0001>
module attributes {stable_mosaic.version = 11 : i64} {
  func.func @_flat_pad_kernel(%arg0: i32, %arg1: i32, %arg2: memref<1x8x128xf32, #tpu.memory_space<vmem>>, %arg3: memref<1x8x128xf32, #tpu.memory_space<vmem>>) attributes {dimension_semantics = [#tpu.dimension_semantics<parallel>, #tpu.dimension_semantics<arbitrary>], iteration_bounds = array<i64: 2, 2>, scalar_prefetch = 0 : i64, scratch_operands = 0 : i64, tpu.core_type = #tpu.core_type<tc>, window_params = [{transform_indices = @transform_0, window_bounds = array<i64: 1, 8, 128>}, {transform_indices = @transform_1, window_bounds = array<i64: 1, 8, 128>}]} {
    %c1_i32 = arith.constant 1 : i32
    %0 = arith.cmpi slt, %arg1, %c1_i32 : i32
    %1 = arith.extui %0 : i1 to i32
    %c0_i32 = arith.constant 0 : i32
    %2 = arith.cmpi ne, %1, %c0_i32 : i32
    scf.if %2 {
      %cst = arith.constant 0.000000e+00 : f32
      %6 = vector.broadcast %cst : f32 to vector<1x8x128xf32>
      %c0 = arith.constant 0 : index
      %c0_2 = arith.constant 0 : index
      %c0_3 = arith.constant 0 : index
      %7 = vector.load %arg3[%c0, %c0_2, %c0_3] : memref<1x8x128xf32, #tpu.memory_space<vmem>>, vector<1x8x128xf32>
      tpu.vector_store %arg3[%c0, %c0_2, %c0_3], %6 {strides = array<i32>} : memref<1x8x128xf32, #tpu.memory_space<vmem>>, vector<1x8x128xf32>,
    } else {
    }
    %c1_i32_0 = arith.constant 1 : i32
    %3 = arith.cmpi sge, %arg1, %c1_i32_0 : i32
    %4 = arith.extui %3 : i1 to i32
    %c0_i32_1 = arith.constant 0 : i32
    %5 = arith.cmpi ne, %4, %c0_i32_1 : i32
    scf.if %5 {
      %c0 = arith.constant 0 : index
      %c0_2 = arith.constant 0 : index
      %c0_3 = arith.constant 0 : index
      %6 = vector.load %arg2[%c0, %c0_2, %c0_3] : memref<1x8x128xf32, #tpu.memory_space<vmem>>, vector<1x8x128xf32>
      %c0_4 = arith.constant 0 : index
      %c0_5 = arith.constant 0 : index
      %c0_6 = arith.constant 0 : index
      %7 = vector.load %arg3[%c0_4, %c0_5, %c0_6] : memref<1x8x128xf32, #tpu.memory_space<vmem>>, vector<1x8x128xf32>
      tpu.vector_store %arg3[%c0_4, %c0_5, %c0_6], %6 {strides = array<i32>} : memref<1x8x128xf32, #tpu.memory_space<vmem>>, vector<1x8x128xf32>,
    } else {
    }
    return
  }
  func.func @transform_0(%arg0: i32, %arg1: i32) -> (i32, i32, i32) {
    %c1_i32 = arith.constant 1 : i32
    %0 = arith.subi %arg1, %c1_i32 : i32
    %c0_i32 = arith.constant 0 : i32
    %1 = arith.maxsi %0, %c0_i32 : i32
    %c0_i32_0 = arith.constant 0 : i32
    %c0_i32_1 = arith.constant 0 : i32
    return %arg0, %1, %c0_i32_0 : i32, i32, i32
  }
  func.func @transform_1(%arg0: i32, %arg1: i32) -> (i32, i32, i32) {
    %c0_i32 = arith.constant 0 : i32
    %c0_i32_0 = arith.constant 0 : i32
    return %arg0, %arg1, %c0_i32 : i32, i32, i32
  }
}

</mosaic_0001>

<bundles_post_ra>
// kernel: tpu_custom_call.1
= control target key start
LH: loop header
LB: loop body
LE: loop exit
PB: predicated region body
PF: predicated region fallthrough
CT: control target
= control target key end

     0   :  { %6 = vsyncpa [#allocation3], 0  ;;  %s774_s0 = inlined_call_operand.hbm [shape: f32[2,8,128], index: 0, kind: input, shape index: {}]   ;;  %s775_s1 = inlined_call_operand.hbm [shape: f32[2,16,128], index: 1, kind: output, shape index: {}]  }
   0x1   :  { %8 = vsyncpa [#allocation3 + $0x1], 0 }
   0x2   :  { %9 = vsyncpa [#allocation4], 0 }
   0x3   :  { %11 = vsyncpa [#allocation4 + $0x1], 0  ;;  %s561_s6 = smov 0   ;;  %s563_s7 = smov 0  }
   0x4   :  { %s565_s8 = smov 0   ;;  %s567_s9 = smov 0  }
   0x5   :  { %s569_s10 = smov 0   ;;  %s571_s11 = smov 0  }
   0x6   :  { %s573_s12 = smov 0   ;;  %s575_s13 = smov 0  }
   0x7   :  { %s577_s14 = smov 0   ;;  %s579_s15 = smov 0  }
   0x8   :  { %s581_s16 = smov 0  }
   0x9 LB: > { %s272_s17 = sadd.s32 4294967295, %s546_s16   ;;  %s273_s18 = sadd.s32 4294967294, %s546_s16   ;;  %s546_s16 = sphi %s581_s16, %s17_s16   ;;  %s542_s15 = sphi %s579_s15, %s795_s15   ;;  %s538_s14 = sphi %s577_s14, %s794_s14   ;;  %s534_s13 = sphi %s575_s13, %s793_s13   ;;  %s530_s12 = sphi %s573_s12, %s792_s12   ;;  %s526_s11 = sphi %s571_s11, %s791_s11   ;;  %s522_s10 = sphi %s569_s10, %s790_s10   ;;  %s518_s9 = sphi %s567_s9, %s789_s9   ;;  %s514_s8 = sphi %s565_s8, %s788_s8   ;;  %s510_s7 = sphi %s563_s7, %s787_s7   ;;  %s506_s6 = sphi %s561_s6, %s786_s6  }
   0xa   : > { %s26_s19 = sadd.s32 1, %s538_s14  ;;  %s29_s20 = sadd.s32 1, %s542_s15 }
   0xb   : > { %p27_p0 = scmp.ge.s32.totalorder %s26_s19, 2  ;;  %s44_s21 = sadd.s32 1, %s526_s11 }
   0xc   : > { %p51_p2 = scmp.ne.s32.totalorder %s526_s11, %s522_s10  ;;  %p52_p3 = scmp.eq.s32.totalorder %s546_s16, 0 }
   0xd   : > { %s797_s19 = smov (%p27_p0, %s26_s19), 0  ;;  %s799_s20 = smov (!%p27_p0, %s29_s20), %s542_s15 }
   0xe   : > { %p31_p1 = scmp.ge.s32.totalorder %s799_s20, 2  ;;  %p57_p4 = scmp.ne.s32.totalorder %s522_s10, %s518_s9 }
   0xf   : > { %p630_p5 = por %p52_p3, %p51_p2  ;;  %p58_p7 = scmp.eq.s32.totalorder %s272_s17, 0 }
  0x10   : > { %s801_s20 = smov (%p31_p1, %s799_s20), 0  ;;  %s68_s24 = ssub.s32 %s538_s14, %s797_s19 }
  0x11   : > { %s39_s22 = ssub.s32 %s542_s15, %s801_s20  ;;  %s72_s25 = sadd.s32 1, %s514_s8 }
  0x12   : > { %p42_p6 = scmp.eq.s32.totalorder %s39_s22, 0  ;;  %p640_p8 = por %p58_p7, %p57_p4 }
  0x13   : > { %s69_s28 = sor.u32 %s68_s24, %s39_s22  ;;  %p82_p10 = scmp.ne.s32.totalorder %s514_s8, %s510_s7 }
  0x14   : > { %s638_s26 = scalar_select %p42_p6, %s526_s11, %s44_s21  }
  0x15   : > { %p70_p9 = scmp.eq.s32.totalorder %s69_s28, 0  ;;  %p83_p11 = scmp.eq.s32.totalorder %s272_s17, 3 }
  0x16   : > { %p88_p12 = scmp.ne.s32.totalorder %s510_s7, %s506_s6  ;;  %p89_p0 = scmp.eq.s32.totalorder %s273_s18, 3 }
  0x17   : > { %s649_s29 = scalar_select %p70_p9, %s514_s8, %s72_s25  }
  0x18   : > { %p651_p13 = por %p83_p11, %p82_p10  ;;  %p303_p1 = scmp.lt.s32.totalorder %s546_s16, 4 }
  0x19   : > { %p656_p2 = por %p89_p0, %p88_p12  ;;  %s109_s3 = sand.u32 1, %s526_s11  }
  0x1a   : > { %s779_s30 = scalar_select %p651_p13, 1, 0 }
  0x1b   : > { %s780_s2 = scalar_select %p656_p2, 1, 0 }
  0x1c   : > { %s278_s4 = sshll.u32 %s109_s3, 3  ;;  %s280_s5 = sshll.u32 %s542_s15, 7 }
  0x1d   : > { %s113_s9 = scalar_lea.vmem [#allocation2], %s278_s4  ;;  %s665_s24 = scalar_lea.hbm %s774_s0, %s280_s5 }
  0x1e   : > { %s124_s21 = sshll.u32 %s113_s9, 4  ;;  %p671_p3 = pnand %p303_p1, %p630_p5  ;;  %s667_s21 = int_to_ptr.vmem [resolvable:$true] %s124_s21 }
  0x1f   : > { %s110_s25 = scalar_lea.sflag [#allocation3], %s109_s3  ;;  %s394_s28 = scalar_lea.hbm %s665_s24, 128 }
  0x20   : > { %p395_p7 = scmp.ne.s32.totalorder %s665_s24, %s394_s28  ;;  %p396_p9 = pneg %p671_p3 }
  0x21   : > { %s399_s23 = scalar_lea.hbm %s774_s0, 256  ;;  %p400_p5 = scmp.lt.u32.totalorder %s665_s24, %s774_s0 }
  0x22   : > { %p397_p10 = pnand %p396_p9, %p395_p7  ;;  %p401_p12 = scmp.lt.u32.totalorder %s399_s23, %s394_s28 }
  0x23   : > { %p403_p1 = scmp.lt.u32.totalorder %s394_s28, %s665_s24 }
  0x24   : > { %p398_p11 = pneg %p397_p10  ;;  %p402_p0 = por %p401_p12, %p400_p5 }
  0x26   : > { %p404_p4 = por %p403_p1, %p402_p0 }
  0x28   : > { %p405_p6 = pnand %p404_p4, %p398_p11 }
  0x2a   : > { %408 = shalt.err (!%p405_p6)
}
  0x2b   : > { %s409_s3 = scalar_lea.vmem %s667_s21, 128  ;;  %s548_s22 = smov [#allocation2]  }
  0x2c   : > { %p410_p7 = scmp.ne.s32.totalorder %s667_s21, %s409_s3  ;;  %s414_s4 = sshll.u32 %s548_s22, 4  ;;  %s415_s4 = int_to_ptr.vmem [resolvable:$false] %s414_s4 }
  0x2d   : > { %s416_s5 = scalar_lea.vmem %s415_s4, 256  ;;  %p417_p13 = scmp.lt.s32.totalorder %s667_s21, %s415_s4 }
  0x2e   : > { %p412_p10 = pnand %p410_p7, %p396_p9  ;;  %p418_p5 = scmp.lt.s32.totalorder %s416_s5, %s409_s3 }
  0x30   : > { %p413_p2 = pneg %p412_p10  ;;  %p419_p12 = por %p418_p5, %p417_p13 }
  0x32   : > { %p420_p0 = pnand %p419_p12, %p413_p2 }
  0x34   : > { %423 = shalt.err (!%p420_p0)
}
  0x35   : > { %298 = dma.hbm_to_vmem [thread:$0]  (!%p671_p3), %s665_s24, 128, %s667_s21, %s110_s25  }
  0x36   : > { %p782_p4 = scmp.lt.s32.totalorder %s546_s16, 5  ;;  %p783_p6 = scmp.ge.s32.totalorder %s546_s16, 1 }
  0x38   : > { %p130_p9 = pnand %p783_p6, %p782_p4 }
  0x39   : > { %s135_s28 = sand.u32 (!%p130_p9), 1, %s522_s10  }
  0x3a   : > { %133 = sbr.rel (%p130_p9) target bundleno = 110 (0x6e), region = 24  ;;  %s282_s23 = sshll.u32 (!%p130_p9), %s135_s28, 3 }
  0x3b   : > { %s136_s9 = scalar_lea.sflag (!%p130_p9), [#allocation3], %s135_s28  ;;  %s139_s17 = scalar_lea.vmem (!%p130_p9), [#allocation2], %s282_s23 }
  0x41   : > { %497 = dma.done.wait (%p640_p8), %s136_s9, 128  }
  0x42   : > { %499 = vsyncadd (%p640_p8), %s136_s9, 4294967168  ;;  %s155_s18 = sand.u32 1, %s510_s7   ;;  %p284_p13 = scmp.ge.s32.totalorder %s530_s12, 1 }
  0x43   : > { %s283_s3 = sshll.u32 %s155_s18, 3  ;;  %v549_v0 = vmov (!%p284_p13), 0.0  }
  0x44   : > { %s157_s22 = scalar_lea.vmem [#allocation5], %s283_s3  ;;  %164 = sbr.rel (%p284_p13) target bundleno = 75 (0x4b), region = 32 }
  0x45   : > { %165 = vst [vmem:[%s157_s22] sm:$0xff] (!%p284_p13), %v549_v0 }
  0x4b PF: > { %p285_p2 = scmp.lt.s32.totalorder %s530_s12, 1 }
  0x4c   : > { %v170_v1 = vld [vmem:[%s139_s17] sm:$0xff] (!%p285_p2) }
  0x4d   : > { %169 = sbr.rel (%p285_p2) target bundleno = 84 (0x54), region = 36  ;;  %171 = vst [vmem:[%s157_s22] sm:$0xff] (!%p285_p2), %v170_v1 }
  0x54 PF: > { %s287_s27 = sshll.u32 %s534_s13, 1  ;;  %s188_s24 = sshll.u32 %s157_s22, 4  ;;  %s716_s24 = int_to_ptr.vmem [resolvable:$true] %s188_s24 }
  0x55   : > { %s184_s21 = sadd.s32 %s530_s12, %s287_s27  ;;  %s173_s23 = scalar_lea.sflag [#allocation4], %s155_s18 }
  0x56   : > { %s288_s25 = sshll.u32 %s184_s21, 7  ;;  %s424_s9 = scalar_lea.vmem %s716_s24, 128 }
  0x57   : > { %s186_s28 = scalar_lea.hbm %s775_s1, %s288_s25  ;;  %p425_p8 = scmp.ne.s32.totalorder %s716_s24, %s424_s9 }
  0x58   : > { %p784_p3 = scmp.ne.s32.totalorder %s779_s30, 0  ;;  %s550_s17 = smov [#allocation5]  }
  0x59   : > { %s428_s13 = sshll.u32 %s550_s17, 4  ;;  %s429_s13 = int_to_ptr.vmem [resolvable:$false] %s428_s13 }
  0x5a   : > { %p426_p11 = pnand %p425_p8, %p784_p3  ;;  %s430_s12 = scalar_lea.vmem %s429_s13, 256 }
  0x5b   : > { %p431_p7 = scmp.lt.s32.totalorder %s716_s24, %s429_s13  ;;  %p432_p10 = scmp.lt.s32.totalorder %s430_s12, %s424_s9 }
  0x5c   : > { %p427_p1 = pneg %p426_p11 }
  0x5d   : > { %p433_p5 = por %p432_p10, %p431_p7 }
  0x5f   : > { %p434_p12 = pnand %p433_p5, %p427_p1 }
  0x61   : > { %437 = shalt.err (!%p434_p12)
}
  0x62   : > { %s438_s3 = scalar_lea.hbm %s186_s28, 128  ;;  %s442_s27 = scalar_lea.hbm %s775_s1, 512 }
  0x63   : > { %p439_p0 = scmp.ne.s32.totalorder %s186_s28, %s438_s3  ;;  %p443_p9 = scmp.lt.u32.totalorder %s186_s28, %s775_s1 }
  0x64   : > { %p444_p13 = scmp.lt.u32.totalorder %s442_s27, %s438_s3  ;;  %p446_p8 = scmp.lt.u32.totalorder %s438_s3, %s186_s28 }
  0x65   : > { %p440_p4 = pnand %p439_p0, %p784_p3 }
  0x66   : > { %p445_p2 = por %p444_p13, %p443_p9 }
  0x67   : > { %p441_p6 = pneg %p440_p4 }
  0x68   : > { %p447_p11 = por %p446_p8, %p445_p2 }
  0x6a   : > { %p448_p1 = pnand %p447_p11, %p441_p6 }
  0x6c   : > { %451 = shalt.err (!%p448_p1)
}
  0x6d   : > { %293 = dma.vmem_to_hbm [thread:$0]  (%p784_p3), %s716_s24, 128, %s186_s28, %s173_s23  }
  0x6e PF: > { %p304_p7 = scmp.ge.s32.totalorder %s546_s16, 2  ;;  %s200_s4 = sand.u32 1, %s506_s6  }
  0x6f   : > { %p785_p10 = scmp.ne.s32.totalorder %s780_s2, 0  ;;  %s201_s5 = scalar_lea.sflag [#allocation4], %s200_s4 }
  0x71   : > { %p300_p5 = pnand %p304_p7, %p785_p10 }
  0x73   : > { %501 = dma.done.wait (!%p300_p5), %s201_s5, 128  }
  0x74   : > { %503 = vsyncadd (!%p300_p5), %s201_s5, 4294967168  ;;  %s17_s16 = sadd.s32 1, %s546_s16   ;;  %s786_s6 = smov %s510_s7 }
  0x75   : > { %p14_p12 = scmp.ge.s32.totalorder %s17_s16, 6   ;;  %s787_s7 = smov %s514_s8 }
  0x76   : > { %s788_s8 = smov %s649_s29  ;;  %s789_s9 = smov %s522_s10 }
  0x77   : > { %s790_s10 = smov %s526_s11  ;;  %s791_s11 = smov %s638_s26 }
  0x78   : > { %s792_s12 = smov %s538_s14  ;;  %s793_s13 = smov %s542_s15 }
  0x79   : > { %s794_s14 = smov %s797_s19  ;;  %s795_s15 = smov %s801_s20 }
  0x7a   :  { %16 = sbr.rel (!%p14_p12) target bundleno = 9 (0x9), region = 77 }
  0x81   :  { %206 = vsyncpa [#allocation3], 1 }
  0x82   :  { %208 = vsyncpa [#allocation3 + $0x1], 1 }
  0x83   :  { %209 = vsyncpa [#allocation4], 1 }
  0x84   :  { %211 = vsyncpa [#allocation4 + $0x1], 1 }

</bundles_post_ra>
